<compile_context>
chip_gen: v7x
topology: tpu7x:2x2x1
jax: 0.10.0
libtpu: 0.0.40
codegen_flags: <defaults>
</compile_context>

<pallas_src>
import math

import jax
import jax.numpy as jnp
from jax.experimental import pallas as pl
from jax.experimental.pallas import tpu as pltpu


def _round_up(n, m):
    return ((n + m - 1) // m) * m


def policy_kernel(x_ref, w1_ref, wd_ref, bd_ref, o_ref):
    # x_ref : (5, tm) f32  -- rows 0..3 = features, row 4 = 1.0 (bias lane)
    # w1_ref: (128, 5) f32 -- b1 folded in as column 4
    # ---- Linear(4 -> 128) + bias (via MXU) + ReLU: (128,5) @ (5,tm) -> (128,tm)
    h = jnp.dot(w1_ref[...], x_ref[...], preferred_element_type=jnp.float32)
    h = jnp.maximum(h, 0.0)                               # single VPU pass over (128, tm)

    # ---- Linear(128 -> 2) folded to one logit-difference row:
    #      d = (w2[1]-w2[0]) @ h + (b2[1]-b2[0]),  shape (1, tm)
    d = jnp.dot(wd_ref[...], h, preferred_element_type=jnp.float32)
    d = d + bd_ref[...]

    # ---- softmax over 2 classes == sigmoid of the logit difference.
    # Numerically stable form (no inf from exp); exact divide -- (1, tm) is tiny.
    pos = d >= 0.0
    e = jnp.exp(jnp.where(pos, -d, d))                    # e in (0, 1]
    inv = 1.0 / (1.0 + e)
    p1 = jnp.where(pos, inv, e * inv)

    o_ref[0:1, :] = 1.0 - p1                              # rows sum to exactly 1
    o_ref[1:2, :] = p1


def policy_forward(x, w1, b1, w2, b2, *, block_b=8192):
    """x: (B, 4) f32. Params in PyTorch nn.Linear layout:
       w1 (128, 4), b1 (128,), w2 (2, 128), b2 (2,).
       Returns (B, 2) f32 softmax probabilities."""
    B, F = x.shape
    H = w1.shape[0]                                   # 128

    # Lane-granular batch padding only (<128 wasted rows), not tm-granular.
    b_pad = _round_up(B, 128)

    # Large lane-dense tile; keep <= 8192 so per-step VMEM fits default scoped limits.
    tm = min(_round_up(block_b, 128), 8192, b_pad)
    if tm >= b_pad and b_pad >= 256:
        # Keep at least 2 grid steps so the "parallel" axis can use both v7x TCs.
        tm = _round_up((b_pad + 1) // 2, 128)
    n_blocks = pl.cdiv(b_pad, tm)                     # last tile may be ragged (clamped)

    # Single fused staging pass: feature-major transpose + constant-1 bias row +
    # zero-pad batch to a lane multiple. (Producing x feature-major upstream would
    # remove this pass entirely.)
    xt = jnp.concatenate([x.T, jnp.ones((1, B), x.dtype)], axis=0)   # (5, B)
    xt = jnp.pad(xt, ((0, 0), (0, b_pad - B)))                       # (5, b_pad)

    w1_aug = jnp.concatenate([w1, b1.reshape(H, 1)], axis=1).astype(jnp.float32)  # (128, 5)
    w_diff = (w2[1] - w2[0]).reshape(1, H).astype(jnp.float32)                    # (1, 128)
    b_diff = (b2[1] - b2[0]).reshape(1, 1).astype(jnp.float32)                    # (1, 1)

    out = pl.pallas_call(
        policy_kernel,
        out_shape=jax.ShapeDtypeStruct((2, b_pad), jnp.float32),
        grid=(n_blocks,),
        in_specs=[
            pl.BlockSpec((F + 1, tm), lambda i: (0, i)),   # x tiles stream over batch
            pl.BlockSpec((H, F + 1), lambda i: (0, 0)),    # weights stay resident
            pl.BlockSpec((1, H), lambda i: (0, 0)),
            pl.BlockSpec((1, 1), lambda i: (0, 0)),
        ],
        out_specs=pl.BlockSpec((2, tm), lambda i: (0, i)),
        compiler_params=pltpu.CompilerParams(
            dimension_semantics=("parallel",)),
    )(xt, w1_aug, w_diff, b_diff)

    # Back to PyTorch-convention (B, 2); drop padded columns.
    return out[:, :B].T


def init_params(key):
    """Deterministic init mimicking nn.Linear default (uniform +/- 1/sqrt(fan_in)),
    stored in PyTorch layout."""
    k1, k2, k3, k4 = jax.random.split(key, 4)
    bound1 = 1.0 / math.sqrt(4.0)
    bound2 = 1.0 / math.sqrt(128.0)
    w1 = jax.random.uniform(k1, (128, 4), jnp.float32, -bound1, bound1)
    b1 = jax.random.uniform(k2, (128,), jnp.float32, -bound1, bound1)
    w2 = jax.random.uniform(k3, (2, 128), jnp.float32, -bound2, bound2)
    b2 = jax.random.uniform(k4, (2,), jnp.float32, -bound2, bound2)
    return w1, b1, w2, b2


if __name__ == "__main__":
    key = jax.random.PRNGKey(0)
    pkey, xkey = jax.random.split(key)
    w1, b1, w2, b2 = init_params(pkey)

    def ref_forward(xs):
        h = jnp.maximum(xs @ w1.T + b1, 0.0)
        logits = h @ w2.T + b2
        return jax.nn.softmax(logits, axis=1)

    # Small batch of CartPole-like 4-dim states (single-tile path).
    x_small = jax.random.normal(xkey, (2, 4), jnp.float32)
    probs = jax.block_until_ready(policy_forward(x_small, w1, b1, w2, b2))
    assert probs.shape == (2, 2)
    # Default MXU precision for f32 matmuls -> loosened tolerance vs f32 reference.
    assert jnp.allclose(probs, ref_forward(x_small), atol=2e-2)
    assert jnp.allclose(jnp.sum(probs, axis=1), 1.0, atol=1e-4)

    # Larger ragged batch: exercises 128-granular padding, the 2-step grid split,
    # and the clamped last tile (uses the default large block_b).
    x_big = jax.random.normal(jax.random.PRNGKey(1), (300, 4), jnp.float32)
    probs_big = jax.block_until_ready(policy_forward(x_big, w1, b1, w2, b2))
    assert probs_big.shape == (300, 2)
    assert jnp.allclose(probs_big, ref_forward(x_big), atol=2e-2)
    assert jnp.allclose(jnp.sum(probs_big, axis=1), 1.0, atol=1e-4)

    print("KERNEL_OK")
</pallas_src>

<mosaic_0001>
module attributes {stable_mosaic.version = 11 : i64} {
  func.func @policy_kernel(%arg0: i32, %arg1: memref<5x128xf32, #tpu.memory_space<vmem>>, %arg2: memref<128x5xf32, #tpu.memory_space<vmem>>, %arg3: memref<1x128xf32, #tpu.memory_space<vmem>>, %arg4: memref<1x1xf32, #tpu.memory_space<vmem>>, %arg5: memref<2x128xf32, #tpu.memory_space<vmem>>) attributes {dimension_semantics = [#tpu.dimension_semantics<parallel>], iteration_bounds = array<i64: 1>, scalar_prefetch = 0 : i64, scratch_operands = 0 : i64, tpu.core_type = #tpu.core_type<tc>, window_params = [{transform_indices = @transform_0, window_bounds = array<i64: 5, 128>}, {pipeline_mode = #tpu.pipeline_mode<synchronous>, transform_indices = @transform_1, window_bounds = array<i64: 128, 5>}, {pipeline_mode = #tpu.pipeline_mode<synchronous>, transform_indices = @transform_2, window_bounds = array<i64: 1, 128>}, {pipeline_mode = #tpu.pipeline_mode<synchronous>, transform_indices = @transform_3, window_bounds = array<i64: 1, 1>}, {transform_indices = @transform_4, window_bounds = array<i64: 2, 128>}]} {
    %c0 = arith.constant 0 : index
    %c0_0 = arith.constant 0 : index
    %0 = vector.load %arg2[%c0, %c0_0] : memref<128x5xf32, #tpu.memory_space<vmem>>, vector<128x5xf32>
    %c0_1 = arith.constant 0 : index
    %c0_2 = arith.constant 0 : index
    %1 = vector.load %arg1[%c0_1, %c0_2] : memref<5x128xf32, #tpu.memory_space<vmem>>, vector<5x128xf32>
    %cst = arith.constant dense<0.000000e+00> : vector<128x128xf32>
    %2 = tpu.matmul %0, %1, %cst {dimension_numbers = #tpu.dot_dimension_numbers<[1], [0], [0], [1], [0, 0, 1, 1], [], []>} : vector<128x5xf32>, vector<5x128xf32>, vector<128x128xf32> -> vector<128x128xf32>
    %cst_3 = arith.constant 0.000000e+00 : f32
    %3 = vector.broadcast %cst_3 : f32 to vector<128x128xf32>
    %4 = arith.maximumf %2, %3 : vector<128x128xf32>
    %c0_4 = arith.constant 0 : index
    %c0_5 = arith.constant 0 : index
    %5 = vector.load %arg3[%c0_4, %c0_5] : memref<1x128xf32, #tpu.memory_space<vmem>>, vector<1x128xf32>
    %cst_6 = arith.constant dense<0.000000e+00> : vector<1x128xf32>
    %6 = tpu.matmul %5, %4, %cst_6 {dimension_numbers = #tpu.dot_dimension_numbers<[1], [0], [0], [1], [0, 0, 1, 1], [], []>} : vector<1x128xf32>, vector<128x128xf32>, vector<1x128xf32> -> vector<1x128xf32>
    %c0_7 = arith.constant 0 : index
    %c0_8 = arith.constant 0 : index
    %7 = vector.load %arg4[%c0_7, %c0_8] : memref<1x1xf32, #tpu.memory_space<vmem>>, vector<1x1xf32>
    %8 = vector.broadcast %7 : vector<1x1xf32> to vector<1x128xf32>
    %9 = arith.addf %6, %8 : vector<1x128xf32>
    %cst_9 = arith.constant 0.000000e+00 : f32
    %10 = vector.broadcast %cst_9 : f32 to vector<1x128xf32>
    %11 = arith.cmpf oge, %9, %10 : vector<1x128xf32>
    %cst_10 = arith.constant 0.000000e+00 : f32
    %12 = vector.broadcast %cst_10 : f32 to vector<1x128xf32>
    %13 = arith.subf %12, %9 : vector<1x128xf32>
    %14 = arith.select %11, %13, %9 : vector<1x128xi1>, vector<1x128xf32>
    %15 = math.exp %14 : vector<1x128xf32>
    %cst_11 = arith.constant 1.000000e+00 : f32
    %16 = vector.broadcast %cst_11 : f32 to vector<1x128xf32>
    %17 = arith.addf %16, %15 : vector<1x128xf32>
    %cst_12 = arith.constant 1.000000e+00 : f32
    %18 = vector.broadcast %cst_12 : f32 to vector<1x128xf32>
    %19 = arith.divf %18, %17 : vector<1x128xf32>
    %20 = arith.mulf %15, %19 : vector<1x128xf32>
    %21 = arith.select %11, %19, %20 : vector<1x128xi1>, vector<1x128xf32>
    %cst_13 = arith.constant 1.000000e+00 : f32
    %22 = vector.broadcast %cst_13 : f32 to vector<1x128xf32>
    %23 = arith.subf %22, %21 : vector<1x128xf32>
    %c0_14 = arith.constant 0 : index
    %c0_15 = arith.constant 0 : index
    %24 = vector.load %arg5[%c0_14, %c0_15] : memref<2x128xf32, #tpu.memory_space<vmem>>, vector<1x128xf32>
    tpu.vector_store %arg5[%c0_14, %c0_15], %23 {strides = array<i32>} : memref<2x128xf32, #tpu.memory_space<vmem>>, vector<1x128xf32>,
    %c1 = arith.constant 1 : index
    %c0_16 = arith.constant 0 : index
    %25 = vector.load %arg5[%c1, %c0_16] : memref<2x128xf32, #tpu.memory_space<vmem>>, vector<1x128xf32>
    tpu.vector_store %arg5[%c1, %c0_16], %21 {strides = array<i32>} : memref<2x128xf32, #tpu.memory_space<vmem>>, vector<1x128xf32>,
    return
  }
  func.func @transform_0(%arg0: i32) -> (i32, i32) {
    %c0_i32 = arith.constant 0 : i32
    %c0_i32_0 = arith.constant 0 : i32
    return %c0_i32, %arg0 : i32, i32
  }
  func.func @transform_1(%arg0: i32) -> (i32, i32) {
    %c0_i32 = arith.constant 0 : i32
    %c0_i32_0 = arith.constant 0 : i32
    %c0_i32_1 = arith.constant 0 : i32
    return %c0_i32, %c0_i32_0 : i32, i32
  }
  func.func @transform_2(%arg0: i32) -> (i32, i32) {
    %c0_i32 = arith.constant 0 : i32
    %c0_i32_0 = arith.constant 0 : i32
    %c0_i32_1 = arith.constant 0 : i32
    return %c0_i32, %c0_i32_0 : i32, i32
  }
  func.func @transform_3(%arg0: i32) -> (i32, i32) {
    %c0_i32 = arith.constant 0 : i32
    %c0_i32_0 = arith.constant 0 : i32
    %c0_i32_1 = arith.constant 0 : i32
    return %c0_i32, %c0_i32_0 : i32, i32
  }
  func.func @transform_4(%arg0: i32) -> (i32, i32) {
    %c0_i32 = arith.constant 0 : i32
    %c0_i32_0 = arith.constant 0 : i32
    return %c0_i32, %arg0 : i32, i32
  }
}

</mosaic_0001>

<bundles_post_ra>
// kernel: tpu_custom_call.1
= control target key start
LH: loop header
LB: loop body
LE: loop exit
PB: predicated region body
PF: predicated region fallthrough
CT: control target
= control target key end

     0   :  { %s644_s0 = inlined_call_operand.vmem [shape: f32[5,128], index: 0, kind: input, shape index: {}]   ;;  %s645_s1 = inlined_call_operand.vmem [shape: f32[128,5], index: 1, kind: input, shape index: {}]   ;;  %s646_s2 = inlined_call_operand.vmem [shape: f32[1,128], index: 2, kind: input, shape index: {}]   ;;  %s647_s3 = inlined_call_operand.<no memory space> [shape: f32[1,1], index: 3, kind: input, shape index: {}]   ;;  %s648_s4 = inlined_call_operand.hbm [shape: f32[2,128], index: 4, kind: output, shape index: {}]  }
   0x1   :  { %v9_v0 = vstv %s647_s3 }
   0x2   :  { %10 = vst [vmem:[#allocation2] sm:$0x1] %v9_v0 }
   0x3   :  { %v36_v1 = vld [vmem:[%s644_s0] sm:$0x1f]  ;;  %vm86_vm0 = vcmask 1044480   ;;  %vm37_vm1 = vcmask 39936   ;;  %v21_v3 = vld [vmem:[%s645_s1 + $0x8] sm:$0xff]  ;;  %v22_v4 = vld [vmem:[%s645_s1 + $0x10] sm:$0xff] }
   0x4   :  { %v20_v2 = vld [vmem:[%s645_s1] sm:$0xff]  ;;  %410 = vmatprep.subr.msk.mxu0 %vm86_vm0, %v36_v1  ;;  %v23_v5 = vld [vmem:[%s645_s1 + $0x18] sm:$0xff] }
   0x5   :  { %412 = vmatprep.mubr.msk.f32.mxu0 %vm37_vm1, %v20_v2  ;;  %411 = vmatpush3.msk.msra.mxu0 %vm86_vm0, %v36_v1  ;;  %v24_v6 = vld [vmem:[%s645_s1 + $0x20] sm:$0xff] }
   0x6   :  { %413 = vmatmul.mubr.msk.f32.vlgmr.msra.gmra.mrb[0].mxu0 %vm37_vm1, %v21_v3 }
   0x7   :  { %415 = vmatprep.mubr.msk.f32.mxu0 %vm37_vm1, %v22_v4 }
   0x8   :  { %11 = vsyncpa [#allocation4], 0  ;;  %v25_v7 = vld [vmem:[%s645_s1 + $0x28] sm:$0xff]  ;;  %v26_v8 = vld [vmem:[%s645_s1 + $0x30] sm:$0xff]  ;;  %v529_v18 = vmov 0.0|0.0   ;;  %vm530_vm2 = vmmov 0   ;;  %v258_v63 = vlaneseq }
   0x9   :  { %v27_v9 = vld [vmem:[%s645_s1 + $0x38] sm:$0xff]  ;;  %v28_v10 = vld [vmem:[%s645_s1 + $0x40] sm:$0xff]  ;;  %v29_v11 = vld [vmem:[%s645_s1 + $0x48] sm:$0xff]  ;;  %471 = vmatprep.subr.bf16.mxu1 %v529_v18  ;;  %v531_v19 = vmov 0.0   ;;  %v532_v21 = vmov 0  }
   0xa   :  { %416 = vmatmul.mubr.msk.f32.gmra.mrb[2].mxu0 %vm37_vm1, %v23_v5  ;;  %v30_v12 = vld [vmem:[%s645_s1 + $0x50] sm:$0xff]  ;;  %v31_v13 = vld [vmem:[%s645_s1 + $0x58] sm:$0xff]  ;;  %v32_v14 = vld [vmem:[%s645_s1 + $0x60] sm:$0xff]  ;;  %468 = vmatprep.mubr.msk.f32.mxu1 %vm530_vm2, %v531_v19  ;;  %v259_v0 = vshrl.u32 %v258_v63, 7 }
   0xb   :  { %418 = vmatprep.mubr.msk.f32.mxu0 %vm37_vm1, %v24_v6  ;;  %v33_v15 = vld [vmem:[%s645_s1 + $0x68] sm:$0xff]  ;;  %v34_v16 = vld [vmem:[%s645_s1 + $0x70] sm:$0xff]  ;;  %v35_v17 = vld [vmem:[%s645_s1 + $0x78] sm:$0xff]  ;;  %500 = vset.pattern.permute.xlu0 %v532_v21 }
   0xc   :  { %v252_v20 = vld [vmem:[#allocation2] sm:$0x1]  ;;  %v260_v1 = vsub.s32 0, %v259_v0 }
   0xd   :  { %255 = vperm.xlu0 %500, %v252_v20   ;;  %v251_v62 = vld [vmem:[%s646_s2] sm:$0x1]  ;;  %s533_s2 = smov [#allocation3]  }
   0xe   :  { %419 = vmatmul.mubr.msk.f32.gmra.mrb[4].mxu0 %vm37_vm1, %v25_v7  ;;  %s351_s3 = sshll.u32 %s533_s2, 4  ;;  %s352_s3 = int_to_ptr.vmem [resolvable:$true] %s351_s3 }
   0xf   :  { %421 = vmatprep.mubr.msk.f32.mxu0 %vm37_vm1, %v26_v8  ;;  %s505_s0 = scalar_lea.vmem %s352_s3, 32  ;;  %p510_p1 = scmp.lt.s32.totalorder %s352_s3, %s352_s3 }
  0x10   :  { %p506_p0 = scmp.ne.s32.totalorder %s352_s3, %s505_s0  ;;  %p511_p2 = scmp.lt.s32.totalorder %s505_s0, %s505_s0 }
  0x12   :  { %422 = vmatmul.mubr.msk.f32.gmra.mrb[6].mxu0 %vm37_vm1, %v27_v9  ;;  %p512_p3 = por %p511_p2, %p510_p1 }
  0x13   :  { %424 = vmatprep.mubr.msk.f32.mxu0 %vm37_vm1, %v28_v10 }
  0x14   :  { %p513_p4 = pnand %p512_p3, %p506_p0 }
  0x16   :  { %425 = vmatmul.mubr.msk.f32.gmra.mrb[8].mxu0 %vm37_vm1, %v29_v11 }
  0x17   :  { %427 = vmatprep.mubr.msk.f32.mxu0 %vm37_vm1, %v30_v12 }
  0x1a   :  { %428 = vmatmul.mubr.msk.f32.gmra.mrb[10].mxu0 %vm37_vm1, %v31_v13 }
  0x1b   :  { %430 = vmatprep.mubr.msk.f32.mxu0 %vm37_vm1, %v32_v14 }
  0x1e   :  { %431 = vmatmul.mubr.msk.f32.gmra.mrb[12].mxu0 %vm37_vm1, %v33_v15 }
  0x1f   :  { %433 = vmatprep.mubr.msk.f32.mxu0 %vm37_vm1, %v34_v16 }
  0x22   :  { %434 = vmatmul.mubr.msk.f32.gmra.mrb[14].mxu0 %vm37_vm1, %v35_v17 }
  0x8c   :  { %v256_v2 = vpop.permute.xlu0 %255 }
  0x8d   :  { %v261_v3 = vrot.slane %v256_v2, %v260_v1 }
  0xd9   :  { %v414_v22 = vpop.f32.mrb[0].mxu0 }
  0xda   :  { %v236_v23 = vmax.f32 %v414_v22, 0.0  ;;  %v156_v24 = vpop.f32.mrb[1].mxu0 }
  0xdb   :  { %v235_v25 = vmax.f32 %v156_v24, 0.0 }
  0xdd   :  { %v417_v26 = vpop.f32.mrb[2].mxu0  ;;  %v472_v27 = vpack.c.bf16 %v236_v23, %v235_v25 }
  0xde   :  { %v238_v28 = vmax.f32 %v417_v26, 0.0  ;;  %v166_v29 = vpop.f32.mrb[3].mxu0 }
  0xdf   :  { %v237_v30 = vmax.f32 %v166_v29, 0.0  ;;  %473 = vmatpush3.bf16.msra.mxu1 %v472_v27 }
  0xe0   :  { %474 = vmatprep.subr.bf16.mxu1 %v529_v18 }
  0xe1   :  { %v475_v31 = vpack.c.bf16 %v238_v28, %v237_v30  ;;  %v420_v32 = vpop.f32.mrb[4].mxu0 }
  0xe2   :  { %v240_v33 = vmax.f32 %v420_v32, 0.0  ;;  %v176_v34 = vpop.f32.mrb[5].mxu0 }
  0xe3   :  { %v239_v35 = vmax.f32 %v176_v34, 0.0  ;;  %476 = vmatpush3.bf16.msra.mxu1 %v475_v31 }
  0xe4   :  { %477 = vmatprep.subr.bf16.mxu1 %v529_v18 }
  0xe5   :  { %v478_v36 = vpack.c.bf16 %v240_v33, %v239_v35  ;;  %v423_v37 = vpop.f32.mrb[6].mxu0 }
  0xe6   :  { %v242_v38 = vmax.f32 %v423_v37, 0.0  ;;  %v186_v39 = vpop.f32.mrb[7].mxu0 }
  0xe7   :  { %v241_v40 = vmax.f32 %v186_v39, 0.0  ;;  %479 = vmatpush3.bf16.msra.mxu1 %v478_v36 }
  0xe8   :  { %480 = vmatprep.subr.bf16.mxu1 %v529_v18 }
  0xe9   :  { %v481_v41 = vpack.c.bf16 %v242_v38, %v241_v40  ;;  %v426_v42 = vpop.f32.mrb[8].mxu0 }
  0xea   :  { %v244_v43 = vmax.f32 %v426_v42, 0.0  ;;  %v196_v44 = vpop.f32.mrb[9].mxu0 }
  0xeb   :  { %v243_v45 = vmax.f32 %v196_v44, 0.0  ;;  %482 = vmatpush3.bf16.msra.mxu1 %v481_v41 }
  0xec   :  { %483 = vmatprep.subr.bf16.mxu1 %v529_v18 }
  0xed   :  { %v484_v46 = vpack.c.bf16 %v244_v43, %v243_v45  ;;  %v429_v47 = vpop.f32.mrb[10].mxu0 }
  0xee   :  { %v246_v48 = vmax.f32 %v429_v47, 0.0  ;;  %v206_v49 = vpop.f32.mrb[11].mxu0 }
  0xef   :  { %v245_v50 = vmax.f32 %v206_v49, 0.0  ;;  %485 = vmatpush3.bf16.msra.mxu1 %v484_v46 }
  0xf0   :  { %486 = vmatprep.subr.bf16.mxu1 %v529_v18 }
  0xf1   :  { %v487_v51 = vpack.c.bf16 %v246_v48, %v245_v50  ;;  %v432_v52 = vpop.f32.mrb[12].mxu0 }
  0xf2   :  { %v248_v53 = vmax.f32 %v432_v52, 0.0  ;;  %v216_v54 = vpop.f32.mrb[13].mxu0 }
  0xf3   :  { %v247_v55 = vmax.f32 %v216_v54, 0.0  ;;  %488 = vmatpush3.bf16.msra.mxu1 %v487_v51 }
  0xf4   :  { %489 = vmatprep.subr.bf16.mxu1 %v529_v18 }
  0xf5   :  { %v490_v56 = vpack.c.bf16 %v248_v53, %v247_v55  ;;  %v435_v57 = vpop.f32.mrb[14].mxu0 }
  0xf6   :  { %v250_v58 = vmax.f32 %v435_v57, 0.0  ;;  %v226_v59 = vpop.f32.mrb[15].mxu0 }
  0xf7   :  { %v249_v60 = vmax.f32 %v226_v59, 0.0  ;;  %491 = vmatpush3.bf16.msra.mxu1 %v490_v56 }
  0xf8   :  { %492 = vmatprep.subr.bf16.mxu1 %v529_v18 }
  0xf9   :  { %v493_v61 = vpack.c.bf16 %v250_v58, %v249_v60 }
  0xfb   :  { %494 = vmatpush3.bf16.msra.mxu1 %v493_v61 }
  0xfe   :  { %469 = vmatmul.mubr.f32.vlgmr.msra.gmra.mrb[0].mxu1 %v251_v62 }
 0x1d1   :  { %v328_v4 = vpop.f32.mrb[0].mxu1 }
 0x1d2   :  { %v329_v5 = vadd.f32 %v328_v4, %v261_v3  ;;  %v470_v6 = vpop.f32.mrb[1].mxu1 }
 0x1d4   :  { %vm332_vm3 = vcmp.ge.f32.partialorder %v329_v5, 0.0  ;;  %v333_v7 = vsub.f32 0.0, %v329_v5 }
 0x1d6   :  { %v334_v8 = vsel %vm332_vm3, %v333_v7, %v329_v5 }
 0x1d7   :  { %v335_v9 = vmul.f32 1.442695, %v334_v8 }
 0x1d9   :  { %501 = vpow2.f32 %v335_v9 }
 0x1e3   :  { %v502_v10 = vpop.eup %501 }
 0x1e4   :  { %v337_v11 = vadd.f32 1.0, %v502_v10 }
 0x1e6   :  { %503 = vrcp.f32 %v337_v11 }
 0x1f0   :  { %v504_v12 = vpop.eup %503 }
 0x1f1   :  { %v340_v13 = vmul.f32 %v504_v12, %v502_v10 }
 0x1f3   :  { %v341_v14 = vsel %vm332_vm3, %v504_v12, %v340_v13 }
 0x1f4   :  { %v342_v15 = vsub.f32 1.0, %v341_v14  ;;  %344 = vst [vmem:[#allocation3 + $0x1] sm:$0x1] %v341_v14 }
 0x1f6   :  { %343 = vst [vmem:[#allocation3] sm:$0x1] %v342_v15 }
 0x1f7   :  { %516 = shalt.err (!%p513_p4)
}
 0x1f8   :  { %s517_s26 = scalar_lea.hbm %s648_s4, 32 }
 0x1f9   :  { %p518_p5 = scmp.ne.s32.totalorder %s648_s4, %s517_s26  ;;  %p521_p6 = scmp.lt.u32.totalorder %s517_s26, %s648_s4 }
 0x1fb   :  { %p523_p7 = pnand %p521_p6, %p518_p5 }
 0x1fd   :  { %526 = shalt.err (!%p523_p7)
}
 0x1fe   :  { %354 = dma.vmem_to_hbm [thread:$0]  %s352_s3, 32, %s648_s4, [#allocation4]  }
 0x1ff   :  { %527 = dma.done.wait [#allocation4], 32  }
 0x200   :  { %528 = vsyncadd [#allocation4], 4294967264 }
 0x201   :  { %358 = vsyncpa [#allocation4], 1 }

</bundles_post_ra>
